<compile_context>
chip_gen: v6e
topology: v6e:2x2x1
jax: 0.10.0
libtpu: 0.0.40
codegen_flags: <defaults>
</compile_context>

<pallas_src>
import jax
import jax.numpy as jnp
import numpy as np
from jax.experimental import pallas as pl
from jax.experimental.pallas import tpu as pltpu


def critic_kernel(x_ref, w1_ref, b1_ref, w2_ref, b2_ref, w3_ref, b3_ref,
                  wq_ref, bq_ref, q_ref):
    f32 = jnp.float32
    # fc1 + relu  (single MXU push; concat(state, action) was done in the wrapper)
    h = jnp.dot(x_ref[...], w1_ref[...], preferred_element_type=f32)
    h = jnp.maximum(h + b1_ref[...], 0.0)
    # fc2 + relu
    h = jnp.dot(h.astype(w2_ref.dtype), w2_ref[...], preferred_element_type=f32)
    h = jnp.maximum(h + b2_ref[...], 0.0)
    # fc3 + relu
    h = jnp.dot(h.astype(w3_ref.dtype), w3_ref[...], preferred_element_type=f32)
    h = jnp.maximum(h + b3_ref[...], 0.0)
    # q head (out_features = 1): VPU multiply + lane reduction instead of a
    # 1-column MXU matmul on a latency-bound kernel.
    q = jnp.sum(h * wq_ref[...], axis=-1, keepdims=True) + bq_ref[...]
    q_ref[...] = q.astype(q_ref.dtype)


def _round_up(x, m):
    return ((x + m - 1) // m) * m


def _choose_batch_tile(B, batch_tile):
    """Large tiles (kernel is grid-step-overhead / DMA bound, not MXU bound).

    Small batches -> one full-batch block.  Larger batches -> biggest tile that
    is <= batch_tile while still giving >= 2 grid steps, so the 'parallel' axis
    can shard across both TensorCores on v7x.
    """
    if B <= 256:
        return B
    return min(batch_tile, _round_up(pl.cdiv(B, 2), 128))


def critic_forward(state, action, params, *, batch_tile=2048):
    """state: (B, state_dim), action: (B, action_dim) -> q: (B, 1)."""
    w1, b1, w2, b2, w3, b3, wq, bq = params
    B = state.shape[0]
    # One trivial HLO on 64 B/row; lets fc1 be a single (tm, in_dim)@(in_dim, fc1)
    # MXU push instead of two K=12 / K=4 pushes plus an extra VPU add.
    x = jnp.concatenate([state, action], axis=1)
    in_dim = x.shape[1]
    fc1, fc2, fc3 = w1.shape[1], w2.shape[1], w3.shape[1]

    tm = _choose_batch_tile(B, batch_tile)
    grid = (pl.cdiv(B, tm),)

    def resident(p):   # weights / biases: same block every step -> stay in VMEM
        return pl.BlockSpec(p.shape, lambda i: (0,) * p.ndim)

    flops = 2 * B * (in_dim * fc1 + fc1 * fc2 + fc2 * fc3 + fc3)
    bytes_accessed = 4 * (x.size + B) + sum(
        int(p.size) * p.dtype.itemsize for p in params)

    return pl.pallas_call(
        critic_kernel,
        out_shape=jax.ShapeDtypeStruct((B, 1), jnp.float32),
        grid=grid,
        in_specs=[pl.BlockSpec((tm, in_dim), lambda i: (i, 0))]
                 + [resident(p) for p in params],
        out_specs=pl.BlockSpec((tm, 1), lambda i: (i, 0)),
        compiler_params=pltpu.CompilerParams(
            dimension_semantics=("parallel",),
            # v5e's scoped-VMEM default is only 16 MiB (vs 32 MiB v6e/v7x);
            # raise it so tm=2048 tiles (~8 MiB double-buffered + padded
            # temporaries) fit on every generation.  32 MiB is <= physical
            # VMEM on v5e/v6e/v7x.
            vmem_limit_bytes=32 * 1024 * 1024,
        ),
        cost_estimate=pl.CostEstimate(flops=flops, transcendentals=0,
                                      bytes_accessed=bytes_accessed),
    )(x, *params)


def init_params(key, state_dim, action_dim, fc1_dim, fc2_dim, fc3_dim):
    """Matches weight_init: N(0, 0.01) weights, zero biases.

    Weights stored as (in, out) == PyTorch weight.T.
    """
    k1, k2, k3, k4 = jax.random.split(key, 4)
    w1 = 0.01 * jax.random.normal(k1, (state_dim + action_dim, fc1_dim), jnp.float32)
    b1 = jnp.zeros((1, fc1_dim), jnp.float32)
    w2 = 0.01 * jax.random.normal(k2, (fc1_dim, fc2_dim), jnp.float32)
    b2 = jnp.zeros((1, fc2_dim), jnp.float32)
    w3 = 0.01 * jax.random.normal(k3, (fc2_dim, fc3_dim), jnp.float32)
    b3 = jnp.zeros((1, fc3_dim), jnp.float32)
    wq = 0.01 * jax.random.normal(k4, (1, fc3_dim), jnp.float32)   # == PyTorch q.weight
    bq = jnp.zeros((1, 1), jnp.float32)
    return (w1, b1, w2, b2, w3, b3, wq, bq)


def reference_forward(state, action, params):
    """Plain-JAX reference matching the PyTorch forward semantics."""
    w1, b1, w2, b2, w3, b3, wq, bq = params
    x = jnp.concatenate([state, action], axis=1)
    x = jnp.maximum(x @ w1 + b1, 0.0)
    x = jnp.maximum(x @ w2 + b2, 0.0)
    x = jnp.maximum(x @ w3 + b3, 0.0)
    return x @ wq.T + bq


if __name__ == "__main__":
    state_dim, action_dim = 12, 4
    fc1_dim, fc2_dim, fc3_dim = 32, 32, 32

    key = jax.random.PRNGKey(0)
    k_s, k_a, k_p = jax.random.split(key, 3)
    params = init_params(k_p, state_dim, action_dim, fc1_dim, fc2_dim, fc3_dim)

    def check(batch, seed):
        ks, ka = jax.random.split(jax.random.PRNGKey(seed))
        s = jax.random.normal(ks, (batch, state_dim), jnp.float32)
        a = jax.random.normal(ka, (batch, action_dim), jnp.float32)
        q = jax.block_until_ready(critic_forward(s, a, params))
        q_ref = reference_forward(s, a, params)
        assert q.shape == (batch, 1), q.shape
        np.testing.assert_allclose(np.asarray(q), np.asarray(q_ref),
                                   rtol=1e-5, atol=1e-5)

    check(8, 0)      # tiny batch: single full-batch block
    check(300, 1)    # non-multiple batch: 2 grid steps, padded last tile
    check(4096, 2)   # replay-buffer batch: 2 x 2048-row "parallel" tiles

    print("KERNEL_OK")
</pallas_src>

<mosaic_0001>
module attributes {stable_mosaic.version = 11 : i64} {
  func.func @critic_kernel(%arg0: i32, %arg1: memref<8x16xf32, #tpu.memory_space<vmem>>, %arg2: memref<16x32xf32, #tpu.memory_space<vmem>>, %arg3: memref<1x32xf32, #tpu.memory_space<vmem>>, %arg4: memref<32x32xf32, #tpu.memory_space<vmem>>, %arg5: memref<1x32xf32, #tpu.memory_space<vmem>>, %arg6: memref<32x32xf32, #tpu.memory_space<vmem>>, %arg7: memref<1x32xf32, #tpu.memory_space<vmem>>, %arg8: memref<1x32xf32, #tpu.memory_space<vmem>>, %arg9: memref<1x1xf32, #tpu.memory_space<vmem>>, %arg10: memref<8x1xf32, #tpu.memory_space<vmem>>) attributes {dimension_semantics = [#tpu.dimension_semantics<parallel>], iteration_bounds = array<i64: 1>, scalar_prefetch = 0 : i64, scratch_operands = 0 : i64, tpu.core_type = #tpu.core_type<tc>, window_params = [{transform_indices = @transform_0, window_bounds = array<i64: 8, 16>}, {pipeline_mode = #tpu.pipeline_mode<synchronous>, transform_indices = @transform_1, window_bounds = array<i64: 16, 32>}, {pipeline_mode = #tpu.pipeline_mode<synchronous>, transform_indices = @transform_2, window_bounds = array<i64: 1, 32>}, {pipeline_mode = #tpu.pipeline_mode<synchronous>, transform_indices = @transform_3, window_bounds = array<i64: 32, 32>}, {pipeline_mode = #tpu.pipeline_mode<synchronous>, transform_indices = @transform_4, window_bounds = array<i64: 1, 32>}, {pipeline_mode = #tpu.pipeline_mode<synchronous>, transform_indices = @transform_5, window_bounds = array<i64: 32, 32>}, {pipeline_mode = #tpu.pipeline_mode<synchronous>, transform_indices = @transform_6, window_bounds = array<i64: 1, 32>}, {pipeline_mode = #tpu.pipeline_mode<synchronous>, transform_indices = @transform_7, window_bounds = array<i64: 1, 32>}, {pipeline_mode = #tpu.pipeline_mode<synchronous>, transform_indices = @transform_8, window_bounds = array<i64: 1, 1>}, {transform_indices = @transform_9, window_bounds = array<i64: 8, 1>}]} {
    %c0 = arith.constant 0 : index
    %c0_0 = arith.constant 0 : index
    %0 = vector.load %arg1[%c0, %c0_0] : memref<8x16xf32, #tpu.memory_space<vmem>>, vector<8x16xf32>
    %c0_1 = arith.constant 0 : index
    %c0_2 = arith.constant 0 : index
    %1 = vector.load %arg2[%c0_1, %c0_2] : memref<16x32xf32, #tpu.memory_space<vmem>>, vector<16x32xf32>
    %cst = arith.constant dense<0.000000e+00> : vector<8x32xf32>
    %2 = tpu.matmul %0, %1, %cst {dimension_numbers = #tpu.dot_dimension_numbers<[1], [0], [0], [1], [0, 0, 1, 1], [], []>} : vector<8x16xf32>, vector<16x32xf32>, vector<8x32xf32> -> vector<8x32xf32>
    %c0_3 = arith.constant 0 : index
    %c0_4 = arith.constant 0 : index
    %3 = vector.load %arg3[%c0_3, %c0_4] : memref<1x32xf32, #tpu.memory_space<vmem>>, vector<1x32xf32>
    %4 = vector.broadcast %3 : vector<1x32xf32> to vector<8x32xf32>
    %5 = arith.addf %2, %4 : vector<8x32xf32>
    %cst_5 = arith.constant 0.000000e+00 : f32
    %6 = vector.broadcast %cst_5 : f32 to vector<8x32xf32>
    %7 = arith.maximumf %5, %6 : vector<8x32xf32>
    %c0_6 = arith.constant 0 : index
    %c0_7 = arith.constant 0 : index
    %8 = vector.load %arg4[%c0_6, %c0_7] : memref<32x32xf32, #tpu.memory_space<vmem>>, vector<32x32xf32>
    %cst_8 = arith.constant dense<0.000000e+00> : vector<8x32xf32>
    %9 = tpu.matmul %7, %8, %cst_8 {dimension_numbers = #tpu.dot_dimension_numbers<[1], [0], [0], [1], [0, 0, 1, 1], [], []>} : vector<8x32xf32>, vector<32x32xf32>, vector<8x32xf32> -> vector<8x32xf32>
    %c0_9 = arith.constant 0 : index
    %c0_10 = arith.constant 0 : index
    %10 = vector.load %arg5[%c0_9, %c0_10] : memref<1x32xf32, #tpu.memory_space<vmem>>, vector<1x32xf32>
    %11 = vector.broadcast %10 : vector<1x32xf32> to vector<8x32xf32>
    %12 = arith.addf %9, %11 : vector<8x32xf32>
    %cst_11 = arith.constant 0.000000e+00 : f32
    %13 = vector.broadcast %cst_11 : f32 to vector<8x32xf32>
    %14 = arith.maximumf %12, %13 : vector<8x32xf32>
    %c0_12 = arith.constant 0 : index
    %c0_13 = arith.constant 0 : index
    %15 = vector.load %arg6[%c0_12, %c0_13] : memref<32x32xf32, #tpu.memory_space<vmem>>, vector<32x32xf32>
    %cst_14 = arith.constant dense<0.000000e+00> : vector<8x32xf32>
    %16 = tpu.matmul %14, %15, %cst_14 {dimension_numbers = #tpu.dot_dimension_numbers<[1], [0], [0], [1], [0, 0, 1, 1], [], []>} : vector<8x32xf32>, vector<32x32xf32>, vector<8x32xf32> -> vector<8x32xf32>
    %c0_15 = arith.constant 0 : index
    %c0_16 = arith.constant 0 : index
    %17 = vector.load %arg7[%c0_15, %c0_16] : memref<1x32xf32, #tpu.memory_space<vmem>>, vector<1x32xf32>
    %18 = vector.broadcast %17 : vector<1x32xf32> to vector<8x32xf32>
    %19 = arith.addf %16, %18 : vector<8x32xf32>
    %cst_17 = arith.constant 0.000000e+00 : f32
    %20 = vector.broadcast %cst_17 : f32 to vector<8x32xf32>
    %21 = arith.maximumf %19, %20 : vector<8x32xf32>
    %c0_18 = arith.constant 0 : index
    %c0_19 = arith.constant 0 : index
    %22 = vector.load %arg8[%c0_18, %c0_19] : memref<1x32xf32, #tpu.memory_space<vmem>>, vector<1x32xf32>
    %23 = vector.broadcast %22 : vector<1x32xf32> to vector<8x32xf32>
    %24 = arith.mulf %21, %23 : vector<8x32xf32>
    %cst_20 = arith.constant dense<0.000000e+00> : vector<8xf32>
    %25 = vector.multi_reduction <add>, %24, %cst_20 [1] : vector<8x32xf32> to vector<8xf32>
    %26 = vector.shape_cast %25 : vector<8xf32> to vector<8x1xf32>
    %c0_21 = arith.constant 0 : index
    %c0_22 = arith.constant 0 : index
    %27 = vector.load %arg9[%c0_21, %c0_22] : memref<1x1xf32, #tpu.memory_space<vmem>>, vector<1x1xf32>
    %28 = vector.broadcast %27 : vector<1x1xf32> to vector<8x1xf32>
    %29 = arith.addf %26, %28 : vector<8x1xf32>
    %c0_23 = arith.constant 0 : index
    %c0_24 = arith.constant 0 : index
    %30 = vector.load %arg10[%c0_23, %c0_24] : memref<8x1xf32, #tpu.memory_space<vmem>>, vector<8x1xf32>
    tpu.vector_store %arg10[%c0_23, %c0_24], %29 {strides = array<i32>} : memref<8x1xf32, #tpu.memory_space<vmem>>, vector<8x1xf32>,
    return
  }
  func.func @transform_0(%arg0: i32) -> (i32, i32) {
    %c0_i32 = arith.constant 0 : i32
    %c0_i32_0 = arith.constant 0 : i32
    return %arg0, %c0_i32 : i32, i32
  }
  func.func @transform_1(%arg0: i32) -> (i32, i32) {
    %c0_i32 = arith.constant 0 : i32
    %c0_i32_0 = arith.constant 0 : i32
    %c0_i32_1 = arith.constant 0 : i32
    return %c0_i32, %c0_i32_0 : i32, i32
  }
  func.func @transform_2(%arg0: i32) -> (i32, i32) {
    %c0_i32 = arith.constant 0 : i32
    %c0_i32_0 = arith.constant 0 : i32
    %c0_i32_1 = arith.constant 0 : i32
    return %c0_i32, %c0_i32_0 : i32, i32
  }
  func.func @transform_3(%arg0: i32) -> (i32, i32) {
    %c0_i32 = arith.constant 0 : i32
    %c0_i32_0 = arith.constant 0 : i32
    %c0_i32_1 = arith.constant 0 : i32
    return %c0_i32, %c0_i32_0 : i32, i32
  }
  func.func @transform_4(%arg0: i32) -> (i32, i32) {
    %c0_i32 = arith.constant 0 : i32
    %c0_i32_0 = arith.constant 0 : i32
    %c0_i32_1 = arith.constant 0 : i32
    return %c0_i32, %c0_i32_0 : i32, i32
  }
  func.func @transform_5(%arg0: i32) -> (i32, i32) {
    %c0_i32 = arith.constant 0 : i32
    %c0_i32_0 = arith.constant 0 : i32
    %c0_i32_1 = arith.constant 0 : i32
    return %c0_i32, %c0_i32_0 : i32, i32
  }
  func.func @transform_6(%arg0: i32) -> (i32, i32) {
    %c0_i32 = arith.constant 0 : i32
    %c0_i32_0 = arith.constant 0 : i32
    %c0_i32_1 = arith.constant 0 : i32
    return %c0_i32, %c0_i32_0 : i32, i32
  }
  func.func @transform_7(%arg0: i32) -> (i32, i32) {
    %c0_i32 = arith.constant 0 : i32
    %c0_i32_0 = arith.constant 0 : i32
    %c0_i32_1 = arith.constant 0 : i32
    return %c0_i32, %c0_i32_0 : i32, i32
  }
  func.func @transform_8(%arg0: i32) -> (i32, i32) {
    %c0_i32 = arith.constant 0 : i32
    %c0_i32_0 = arith.constant 0 : i32
    %c0_i32_1 = arith.constant 0 : i32
    return %c0_i32, %c0_i32_0 : i32, i32
  }
  func.func @transform_9(%arg0: i32) -> (i32, i32) {
    %c0_i32 = arith.constant 0 : i32
    %c0_i32_0 = arith.constant 0 : i32
    return %arg0, %c0_i32 : i32, i32
  }
}

</mosaic_0001>

<bundles_post_ra>
// kernel: tpu_custom_call.1
= control target key start
LH: loop header
LB: loop body
LE: loop exit
PB: predicated region body
PF: predicated region fallthrough
CT: control target
= control target key end

     0   :  { %s618_s0 = inlined_call_operand.hbm [shape: f32[8,16], index: 0, kind: input, shape index: {}]   ;;  %s619_s1 = inlined_call_operand.hbm [shape: f32[16,32], index: 1, kind: input, shape index: {}]   ;;  %s620_s2 = inlined_call_operand.vmem [shape: f32[1,32], index: 2, kind: input, shape index: {}]   ;;  %s621_s3 = inlined_call_operand.hbm [shape: f32[32,32], index: 3, kind: input, shape index: {}]   ;;  %s622_s4 = inlined_call_operand.vmem [shape: f32[1,32], index: 4, kind: input, shape index: {}]   ;;  %s623_s5 = inlined_call_operand.hbm [shape: f32[32,32], index: 5, kind: input, shape index: {}]   ;;  %s624_s6 = inlined_call_operand.vmem [shape: f32[1,32], index: 6, kind: input, shape index: {}]   ;;  %s625_s7 = inlined_call_operand.vmem [shape: f32[1,32], index: 7, kind: input, shape index: {}]   ;;  %s626_s8 = inlined_call_operand.<no memory space> [shape: f32[1,1], index: 8, kind: input, shape index: {}]   ;;  %s627_s9 = inlined_call_operand.vmem [shape: f32[8,1], index: 9, kind: output, shape index: {}]  }
   0x1   :  { %v14_v0 = vstv %s626_s8 }
   0x2   :  { %15 = vst [vmem:[#allocation2] sm:$0x1] %v14_v0 }
   0x3   :  { %16 = vsyncpa [#allocation4], 0 }
   0x4   :  { %17 = vsyncpa [#allocation6], 0 }
   0x5   :  { %18 = vsyncpa [#allocation9], 0  ;;  %s515_s11 = smov [#allocation5]  }
   0x6   :  { %s34_s12 = sshll.u32 %s515_s11, 4  ;;  %s35_s12 = int_to_ptr.vmem [resolvable:$true] %s34_s12 }
   0x7   :  { %s437_s13 = scalar_lea.vmem %s35_s12, 256  ;;  %p442_p1 = scmp.lt.s32.totalorder %s35_s12, %s35_s12 }
   0x8   :  { %p438_p0 = scmp.ne.s32.totalorder %s35_s12, %s437_s13  ;;  %p443_p2 = scmp.lt.s32.totalorder %s437_s13, %s437_s13 }
   0xa   :  { %p444_p3 = por %p443_p2, %p442_p1 }
   0xc   :  { %p445_p4 = pnand %p444_p3, %p438_p0 }
   0xe   :  { %448 = shalt.err (!%p445_p4)
}
   0xf   :  { %s516_s14 = smov 128   ;;  %s517_s15 = smov 8  }
  0x10   :  { %40 = dma.hbm_to_vmem [thread:$0]  %s619_s1, 256, %s35_s12, [#allocation6], %s516_s14, %s516_s14, %s517_s15  }
  0x11   :  { %s518_s17 = smov [#allocation3]   ;;  %s519_s19 = smov [#allocation7]  }
  0x12   :  { %s25_s18 = sshll.u32 %s518_s17, 4  ;;  %s48_s20 = sshll.u32 %s519_s19, 4  ;;  %s26_s18 = int_to_ptr.vmem [resolvable:$true] %s25_s18  ;;  %s49_s20 = int_to_ptr.vmem [resolvable:$true] %s48_s20 }
  0x13   :  { %s457_s21 = scalar_lea.vmem %s26_s18, 128  ;;  %p462_p6 = scmp.lt.s32.totalorder %s26_s18, %s26_s18 }
  0x14   :  { %p458_p5 = scmp.ne.s32.totalorder %s26_s18, %s457_s21  ;;  %p463_p7 = scmp.lt.s32.totalorder %s457_s21, %s457_s21 }
  0x16   :  { %p464_p8 = por %p463_p7, %p462_p6 }
  0x18   :  { %p465_p9 = pnand %p464_p8, %p458_p5 }
  0x1a   :  { %468 = shalt.err (!%p465_p9)
}
  0x1b   :  { %28 = dma.hbm_to_vmem [thread:$0]  %s618_s0, 128, %s26_s18, [#allocation4]  }
  0x1c   :  { %s477_s24 = scalar_lea.vmem %s49_s20, 512  ;;  %p482_p11 = scmp.lt.s32.totalorder %s49_s20, %s49_s20 }
  0x1d   :  { %p478_p10 = scmp.ne.s32.totalorder %s49_s20, %s477_s24  ;;  %p483_p12 = scmp.lt.s32.totalorder %s477_s24, %s477_s24 }
  0x1f   :  { %p484_p13 = por %p483_p12, %p482_p11 }
  0x21   :  { %p485_p0 = pnand %p484_p13, %p478_p10 }
  0x23   :  { %488 = shalt.err (!%p485_p0)
}
  0x24   :  { %54 = dma.hbm_to_vmem [thread:$0]  %s621_s3, 512, %s49_s20, [#allocation6], %s516_s14, %s516_s14, %s517_s15  }
  0x25   :  { %s520_s26 = smov [#allocation8]  }
  0x26   :  { %s62_s27 = sshll.u32 %s520_s26, 4  ;;  %s63_s27 = int_to_ptr.vmem [resolvable:$true] %s62_s27 }
  0x27   :  { %s497_s28 = scalar_lea.vmem %s63_s27, 512  ;;  %p502_p2 = scmp.lt.s32.totalorder %s63_s27, %s63_s27 }
  0x28   :  { %p498_p1 = scmp.ne.s32.totalorder %s63_s27, %s497_s28  ;;  %p503_p3 = scmp.lt.s32.totalorder %s497_s28, %s497_s28 }
  0x2a   :  { %p504_p4 = por %p503_p3, %p502_p2 }
  0x2c   :  { %p505_p5 = pnand %p504_p4, %p498_p1 }
  0x2e   :  { %508 = shalt.err (!%p505_p5)
}
  0x2f   :  { %68 = dma.hbm_to_vmem [thread:$0]  %s623_s5, 512, %s63_s27, [#allocation9], %s516_s14, %s516_s14, %s517_s15  }
  0x30   :  { %509 = dma.done.wait [#allocation4], 128  }
  0x31   :  { %510 = vsyncadd [#allocation4], 4294967168 }
  0x32   :  { %511 = dma.done.wait [#allocation6], 768  }
  0x33   :  { %512 = vsyncadd [#allocation6], 4294966528 }
  0x34   :  { %513 = dma.done.wait [#allocation9], 512  }
  0x35   :  { %514 = vsyncadd [#allocation9], 4294966784  ;;  %v521_v1 = vmov 0.0   ;;  %vm522_vm0 = vmmov 0   ;;  %v89_v2 = vld [vmem:[#allocation5 + $0x8] sm:$0xff]  ;;  %v88_v3 = vld [vmem:[#allocation5] sm:$0xff] }
  0x36   :  { %392 = vmatprep.subr.mxu0 %v521_v1  ;;  %396 = vmatprep.mubr.msk.f32.mxu0 %vm522_vm0, %v521_v1  ;;  %v87_v4 = vld [vmem:[#allocation3] sm:$0xff]  ;;  %vm97_vm1 = vcmask 130048   ;;  %v175_v5 = vld [vmem:[#allocation7 + $0x18] sm:$0xff]  ;;  %v174_v6 = vld [vmem:[#allocation7 + $0x10] sm:$0xff]  ;;  %vm183_vm2 = vcmask 261120   ;;  %vm362_vm3 = vcmask 7168  }
  0x37   :  { %399 = vmatprep.subr.mxu1 %v521_v1  ;;  %407 = vmatprep.mubr.msk.f32.mxu1 %vm522_vm0, %v521_v1  ;;  %v173_v7 = vld [vmem:[#allocation7 + $0x8] sm:$0xff]  ;;  %v172_v8 = vld [vmem:[#allocation7] sm:$0xff]  ;;  %v261_v9 = vld [vmem:[#allocation8 + $0x18] sm:$0xff] }
  0x38   :  { %393 = vmatpush3.msra.mxu0 %v89_v2  ;;  %400 = vmatpush3.msra.mxu1 %v175_v5  ;;  %v371_v10 = vld [vmem:[%s620_s2] ss:$0 sm:$0xff]  ;;  %v260_v15 = vld [vmem:[#allocation8 + $0x10] sm:$0xff]  ;;  %v259_v16 = vld [vmem:[#allocation8 + $0x8] sm:$0xff] }
  0x39   :  { %394 = vmatprep.subr.mxu0 %v521_v1  ;;  %401 = vmatprep.subr.mxu1 %v521_v1  ;;  %v258_v17 = vld [vmem:[#allocation8] sm:$0xff] }
  0x3a   :  { %395 = vmatpush3.msra.mxu0 %v88_v3  ;;  %402 = vmatpush3.msra.mxu1 %v174_v6  ;;  %v373_v18 = vld [vmem:[%s622_s4] ss:$0 sm:$0xff] }
  0x3b   :  { %397 = vmatmul.mubr.msk.f32.vlgmr.msra.gmra.mxu0 %vm97_vm1, %v87_v4  ;;  %410 = vmatprep.subr.mxu0 %v521_v1  ;;  %v375_v23 = vld [vmem:[%s624_s6] ss:$0 sm:$0xff] }
  0x3c   :  { %418 = vmatprep.mubr.msk.f32.mxu0 %vm522_vm0, %v521_v1  ;;  %403 = vmatprep.subr.mxu1 %v521_v1  ;;  %v377_v27 = vld [vmem:[%s625_s7] ss:$0 sm:$0xff] }
  0x3d   :  { %404 = vmatpush3.msra.mxu1 %v173_v7  ;;  %411 = vmatpush3.msra.mxu0 %v261_v9  ;;  %v378_v31 = vld [vmem:[#allocation2] ss:$0 sm:$0xff] }
  0x3e   :  { %405 = vmatprep.subr.mxu1 %v521_v1  ;;  %412 = vmatprep.subr.mxu0 %v521_v1 }
  0x3f   :  { %406 = vmatpush3.msra.mxu1 %v172_v8  ;;  %413 = vmatpush3.msra.mxu0 %v260_v15 }
  0x40   :  { %414 = vmatprep.subr.mxu0 %v521_v1 }
  0x41   :  { %415 = vmatpush3.msra.mxu0 %v259_v16 }
  0x42   :  { %416 = vmatprep.subr.mxu0 %v521_v1 }
  0x43   :  { %417 = vmatpush3.msra.mxu0 %v258_v17 }
  0xfb   :  { %v167_v11 = vpop.f32.mrf.mxu0 }
  0xfc   :  { %v168_v12 = vadd.f32 %v371_v10, %v167_v11 }
  0xfd   :  { %v398_v13 = vpop.f32.mrf.mxu0 }
  0xfe   :  { %v171_v14 = vmax.f32 %v168_v12, 0.0 }
 0x100   :  { %408 = vmatmul.mubr.msk.f32.vlgmr.msra.gmra.mxu1 %vm183_vm2, %v171_v14 }
 0x1c0   :  { %v253_v19 = vpop.f32.mrf.mxu1 }
 0x1c1   :  { %v254_v20 = vadd.f32 %v373_v18, %v253_v19 }
 0x1c2   :  { %v409_v21 = vpop.f32.mrf.mxu1 }
 0x1c3   :  { %v257_v22 = vmax.f32 %v254_v20, 0.0 }
 0x1c5   :  { %419 = vmatmul.mubr.msk.f32.vlgmr.msra.gmra.mxu0 %vm183_vm2, %v257_v22 }
 0x285   :  { %v338_v24 = vpop.f32.mrf.mxu0 }
 0x286   :  { %v339_v25 = vadd.f32 %v375_v23, %v338_v24 }
 0x287   :  { %v420_v26 = vpop.f32.mrf.mxu0 }
 0x288   :  { %v342_v28 = vmax.f32 %v339_v25, 0.0 }
 0x28a   :  { %v350_v29 = vmul.f32 %v377_v27, %v342_v28 }
 0x28c   :  { %v351_v30 = vsel %vm183_vm2, %v350_v29, 0.0 }
 0x28d   :  { %352 = vadd.xlane.f32.xlu0 %v351_v30 }
 0x316   :  { %v353_v32 = vpop.xlane.xlu0 %352 }
 0x317   :  { %v361_v33 = vadd.f32 %v378_v31, %v353_v32 }
 0x319   :  { %363 = vst.msk [vmem:[%s627_s9] sm:$0xff] %vm362_vm3, %v361_v33 }
 0x31a   :  { %368 = vsyncpa [#allocation4], 1 }
 0x31b   :  { %369 = vsyncpa [#allocation6], 1 }
 0x31c   :  { %370 = vsyncpa [#allocation9], 1 }

</bundles_post_ra>
